<compile_context>
chip_gen: v6e
topology: v6e:2x2x1
jax: 0.10.0
libtpu: 0.0.40
codegen_flags: <defaults>
</compile_context>

<pallas_src>
import jax
import jax.numpy as jnp
from jax.experimental import pallas as pl
from jax.experimental.pallas import tpu as pltpu

_NEG = -1e30  # additive mask value; ReLU maps it to 0, the max-pool identity


def make_cnnnet_kernel(B, S, H, C, fsz_max):
    BS = B * S

    def kernel(x_ref, wc_ref, misc_ref, o_ref):
        # x   : (BS, H)          f32
        # wc  : (fsz_max*H, C)   bf16   branch-packed, zero-padded conv weights
        # misc: (BS + C + 1, W)  f32    rows [0, BS)      cols [0, C): bias + row mask
        #                               rows [BS, BS + C) cols [0, H): linear weight
        #                               row  BS + C       cols [0, H): linear bias
        # o   : (B, H)           f32
        x = x_ref[...]

        # Windowed input: x_win[m, r*H:(r+1)*H] = x[(m + r) mod BS].
        # Rolls are done in f32 (sublane rolls on packed bf16 would need
        # unpack/repack); cast to bf16 only for the MXU operand.
        pieces = [x] + [pltpu.roll(x, shift=BS - r, axis=0)
                        for r in range(1, fsz_max)]
        x_win = jnp.concatenate(pieces, axis=1).astype(jnp.bfloat16)  # (BS, fsz_max*H)

        # All conv branches in ONE MXU contraction (K = fsz_max * H).
        # Wrapped / cross-batch window rows only contribute where either the
        # conv weight is zero-padded (r >= fsz_i) or the row is masked below.
        acc = jnp.dot(x_win, wc_ref[...],
                      preferred_element_type=jnp.float32)             # (BS, C) f32

        # Precomputed additive conv-bias + validity mask, then ReLU.  Invalid
        # rows (l > S - fsz_i) get -1e30 -> exactly 0 after ReLU, which is the
        # identity for the max-pool (all valid post-ReLU values are >= 0).
        acc = jnp.maximum(acc + misc_ref[0:BS, 0:C], 0.0)

        # Global max-pool per batch: single segmented XLU reduce (S % 8 == 0).
        pooled = jnp.max(acc.reshape(B, S, C), axis=1)                 # (B, C)

        # "concat + dropout(eval => identity) + Linear", kept in f32 (tiny and
        # off the critical path; avoids extra bf16 head error).
        wl = misc_ref[BS:BS + C, 0:H]                                  # (C, H)
        bl = misc_ref[BS + C:BS + C + 1, 0:H]                          # (1, H)
        o_ref[...] = jnp.dot(pooled, wl,
                             preferred_element_type=jnp.float32) + bl

    return kernel


def _pack_params(conv_ws, conv_bs, w_lin, b_lin, filter_sizes, B, S, H):
    """Host-side packing (done once at model-load time in practice)."""
    fsz_max = max(filter_sizes)
    FN = conv_ws[0].shape[-1]
    n = len(filter_sizes)
    C = n * FN
    BS = B * S

    # Branch-packed conv weights, zero-padded to fsz_max, flattened along K.
    wc = jnp.zeros((fsz_max, H, C), jnp.float32)
    for i, (fsz, w) in enumerate(zip(filter_sizes, conv_ws)):
        wc = wc.at[:fsz, :, i * FN:(i + 1) * FN].set(w)
    wc_flat = wc.reshape(fsz_max * H, C).astype(jnp.bfloat16)

    # Additive conv bias + row-validity mask (bias where valid, -1e30 where not).
    pos = jnp.arange(BS) % S                                   # position within batch
    biasmask = jnp.zeros((BS, C), jnp.float32)
    for i, (fsz, b) in enumerate(zip(filter_sizes, conv_bs)):
        valid = (pos <= S - fsz)[:, None]                      # (BS, 1)
        vals = jnp.where(valid, jnp.broadcast_to(b, (BS, FN)), _NEG)
        biasmask = biasmask.at[:, i * FN:(i + 1) * FN].set(vals)

    # Single f32 "misc" buffer: bias+mask, linear weight, linear bias.
    Wcol = max(C, H)
    misc = jnp.zeros((BS + C + 1, Wcol), jnp.float32)
    misc = misc.at[0:BS, 0:C].set(biasmask)
    misc = misc.at[BS:BS + C, 0:H].set(jnp.asarray(w_lin, jnp.float32))
    misc = misc.at[BS + C, 0:H].set(jnp.asarray(b_lin, jnp.float32).reshape(H))
    return wc_flat, misc, C, fsz_max


def cnnnet_forward(x, conv_ws, conv_bs, w_lin, b_lin, *, filter_sizes):
    """x: (B, S, H) float32.  Returns eval-mode logits (B, H) float32."""
    B, S, H = x.shape
    filter_sizes = tuple(int(f) for f in filter_sizes)
    FN = conv_ws[0].shape[-1]

    assert S % 8 == 0, "per-batch segmented max-pool requires S % 8 == 0"
    assert all(1 <= f <= S for f in filter_sizes), "need 1 <= fsz <= S"
    assert w_lin.shape == (len(filter_sizes) * FN, H)

    wc_flat, misc, C, fsz_max = _pack_params(
        conv_ws, conv_bs, w_lin, b_lin, filter_sizes, B, S, H)

    x_flat = x.reshape(B * S, H).astype(jnp.float32)

    vmem = pl.BlockSpec(memory_space=pltpu.MemorySpace.VMEM)
    kernel = make_cnnnet_kernel(B, S, H, C, fsz_max)

    # The whole problem is a few tens of KiB: a single gridless program keeps
    # cost to pallas_call fixed overhead + 3 tiny input DMAs on all of
    # v5e / v6e / v7x.
    # TODO(synk): once B grows to several hundred rows of work, add a leading
    # batch grid axis with dimension_semantics=("parallel",) so v7x's second
    # TensorCore is used, sizing per-step blocks for v7x's 64 MiB VMEM
    # (raise vmem_limit_bytes accordingly).
    return pl.pallas_call(
        kernel,
        out_shape=jax.ShapeDtypeStruct((B, H), jnp.float32),
        in_specs=[vmem, vmem, vmem],
        out_specs=vmem,
    )(x_flat, wc_flat, misc)


def cnnnet_reference(x, conv_ws, conv_bs, w_lin, b_lin, filter_sizes):
    """Pure-JAX f32 reference matching the PyTorch eval-mode forward."""
    B, S, H = x.shape
    pooled = []
    for fsz, w, b in zip(filter_sizes, conv_ws, conv_bs):
        L = S - fsz + 1
        acc = jnp.zeros((B, L, w.shape[-1]), jnp.float32)
        for r in range(fsz):
            acc = acc + jnp.einsum("bsh,hf->bsf", x[:, r:r + L, :], w[r])
        acc = jnp.maximum(acc + b[None, :, :], 0.0)
        pooled.append(jnp.max(acc, axis=1))
    feat = jnp.concatenate(pooled, axis=1)
    return feat @ w_lin + b_lin


if __name__ == "__main__":
    # Small shapes consistent with the module's forward.
    B, S = 2, 16
    hidden_size = 32
    filter_num = 8
    filter_sizes_str = "2,3,4"
    dropout_rate = 0.5  # TODO(synk): dropout runs in eval mode (identity); training-mode masking omitted.

    fsizes = [int(f) for f in filter_sizes_str.split(",")]
    n = len(fsizes)

    key = jax.random.PRNGKey(0)
    keys = jax.random.split(key, 2 * n + 3)

    # Deterministic parameter init (shapes match nn.Conv2d / nn.Linear, transposed).
    conv_ws, conv_bs = [], []
    for i, fsz in enumerate(fsizes):
        conv_ws.append(0.1 * jax.random.normal(
            keys[2 * i], (fsz, hidden_size, filter_num), dtype=jnp.float32))
        conv_bs.append(0.1 * jax.random.normal(
            keys[2 * i + 1], (1, filter_num), dtype=jnp.float32))
    w_lin = 0.1 * jax.random.normal(keys[2 * n], (n * filter_num, hidden_size),
                                    dtype=jnp.float32)
    b_lin = 0.1 * jax.random.normal(keys[2 * n + 1], (1, hidden_size),
                                    dtype=jnp.float32)
    x = jax.random.normal(keys[2 * n + 2], (B, S, hidden_size), dtype=jnp.float32)

    logits = cnnnet_forward(x, conv_ws, conv_bs, w_lin, b_lin, filter_sizes=fsizes)
    logits = jax.block_until_ready(logits)
    assert logits.shape == (B, hidden_size)

    # Numerical check vs f32 reference (loose tolerance for bf16 MXU operands).
    ref = cnnnet_reference(x, conv_ws, conv_bs, w_lin, b_lin, fsizes)
    max_err = float(jnp.max(jnp.abs(logits - ref)))
    assert max_err < 0.15, f"mismatch vs reference: max abs err = {max_err}"

    print("KERNEL_OK")
</pallas_src>

<mosaic_0001>
module attributes {stable_mosaic.version = 11 : i64} {
  func.func @kernel(%arg0: memref<32x32xf32, #tpu.memory_space<vmem>>, %arg1: memref<128x24xbf16, #tpu.memory_space<vmem>>, %arg2: memref<57x32xf32, #tpu.memory_space<vmem>>, %arg3: memref<2x32xf32, #tpu.memory_space<vmem>>) attributes {dimension_semantics = [], scalar_prefetch = 0 : i64, scratch_operands = 0 : i64, tpu.core_type = #tpu.core_type<tc>} {
    %c0 = arith.constant 0 : index
    %c0_0 = arith.constant 0 : index
    %0 = vector.load %arg0[%c0, %c0_0] : memref<32x32xf32, #tpu.memory_space<vmem>>, vector<32x32xf32>
    %c31_i32 = arith.constant 31 : i32
    %1 = tpu.dynamic_rotate %0 by %c31_i32 dim 0 : vector<32x32xf32>, i32 -> vector<32x32xf32>
    %c30_i32 = arith.constant 30 : i32
    %2 = tpu.dynamic_rotate %0 by %c30_i32 dim 0 : vector<32x32xf32>, i32 -> vector<32x32xf32>
    %c29_i32 = arith.constant 29 : i32
    %3 = tpu.dynamic_rotate %0 by %c29_i32 dim 0 : vector<32x32xf32>, i32 -> vector<32x32xf32>
    %4 = tpu.concatenate %0, %1, %2, %3 in 1 : vector<32x32xf32>, vector<32x32xf32>, vector<32x32xf32>, vector<32x32xf32> -> vector<32x128xf32>
    %5 = arith.truncf %4 : vector<32x128xf32> to vector<32x128xbf16>
    %c0_1 = arith.constant 0 : index
    %c0_2 = arith.constant 0 : index
    %6 = vector.load %arg1[%c0_1, %c0_2] : memref<128x24xbf16, #tpu.memory_space<vmem>>, vector<128x24xbf16>
    %cst = arith.constant dense<0.000000e+00> : vector<32x24xf32>
    %7 = tpu.matmul %5, %6, %cst {dimension_numbers = #tpu.dot_dimension_numbers<[1], [0], [0], [1], [0, 0, 1, 1], [], []>} : vector<32x128xbf16>, vector<128x24xbf16>, vector<32x24xf32> -> vector<32x24xf32>
    %c0_3 = arith.constant 0 : index
    %c0_4 = arith.constant 0 : index
    %8 = vector.load %arg2[%c0_3, %c0_4] : memref<57x32xf32, #tpu.memory_space<vmem>>, vector<32x24xf32>
    %9 = arith.addf %7, %8 : vector<32x24xf32>
    %cst_5 = arith.constant 0.000000e+00 : f32
    %10 = vector.broadcast %cst_5 : f32 to vector<32x24xf32>
    %11 = arith.maximumf %9, %10 : vector<32x24xf32>
    %12 = vector.shape_cast %11 : vector<32x24xf32> to vector<2x16x24xf32>
    %cst_6 = arith.constant dense<0xFF800000> : vector<2x24xf32>
    %13 = vector.multi_reduction <maximumf>, %12, %cst_6 [1] : vector<2x16x24xf32> to vector<2x24xf32>
    %c32 = arith.constant 32 : index
    %c0_7 = arith.constant 0 : index
    %14 = vector.load %arg2[%c32, %c0_7] : memref<57x32xf32, #tpu.memory_space<vmem>>, vector<24x32xf32>
    %c56 = arith.constant 56 : index
    %c0_8 = arith.constant 0 : index
    %15 = vector.load %arg2[%c56, %c0_8] : memref<57x32xf32, #tpu.memory_space<vmem>>, vector<1x32xf32>
    %cst_9 = arith.constant dense<0.000000e+00> : vector<2x32xf32>
    %16 = tpu.matmul %13, %14, %cst_9 {dimension_numbers = #tpu.dot_dimension_numbers<[1], [0], [0], [1], [0, 0, 1, 1], [], []>} : vector<2x24xf32>, vector<24x32xf32>, vector<2x32xf32> -> vector<2x32xf32>
    %17 = vector.broadcast %15 : vector<1x32xf32> to vector<2x32xf32>
    %18 = arith.addf %16, %17 : vector<2x32xf32>
    %c0_10 = arith.constant 0 : index
    %c0_11 = arith.constant 0 : index
    %19 = vector.load %arg3[%c0_10, %c0_11] : memref<2x32xf32, #tpu.memory_space<vmem>>, vector<2x32xf32>
    tpu.vector_store %arg3[%c0_10, %c0_11], %18 {strides = array<i32>} : memref<2x32xf32, #tpu.memory_space<vmem>>, vector<2x32xf32>,
    return
  }
}

</mosaic_0001>

<bundles_post_ra>
// kernel: tpu_custom_call.1
= control target key start
LH: loop header
LB: loop body
LE: loop exit
PB: predicated region body
PF: predicated region fallthrough
CT: control target
= control target key end

     0   :  { %v24_v3 = vlaneseq  ;;  %s473_s23 = smov 64   ;;  %s474_s24 = smov 32   ;;  %s599_s0 = inlined_call_operand.vmem [shape: f32[32,32], index: 0, kind: input, shape index: {}]   ;;  %s600_s1 = inlined_call_operand.vmem [shape: bf16[128,24], index: 1, kind: input, shape index: {}]   ;;  %s601_s2 = inlined_call_operand.vmem [shape: f32[57,32], index: 2, kind: input, shape index: {}]   ;;  %s602_s3 = inlined_call_operand.hbm [shape: f32[2,32], index: 3, kind: output, shape index: {}]  }
   0x1   :  { %v502_v0 = vld [vmem:[%s599_s0] sm:$0xff]  ;;  %v507_v1 = vld [vmem:[%s599_s0 + $0x8] sm:$0xff]  ;;  %v512_v2 = vld [vmem:[%s599_s0 + $0x10] sm:$0xff] }
   0x2   :  { %v31_v4 = vrot.slane %v502_v0, 2  ;;  %v32_v5 = vrot.slane %v507_v1, 2  ;;  %v33_v6 = vrot.slane %v512_v2, 2  ;;  %v20_v7 = vrot.slane %v502_v0, 1  ;;  %v521_v8 = vld [vmem:[%s599_s0 + $0x18] sm:$0xff]  ;;  %v444_v19 = vld [vmem:[%s600_s1 + $0x30] sm:$0xff]  }
   0x3   :  { %v25_v9 = vshrl.u32 %v24_v3, 7  ;;  %v21_v10 = vrot.slane %v507_v1, 1  ;;  %v22_v11 = vrot.slane %v512_v2, 1  ;;  %v34_v12 = vrot.slane %v521_v8, 2  ;;  %v443_v18 = vld [vmem:[%s600_s1 + $0x38] sm:$0xff]   ;;  %v445_v36 = vld [vmem:[%s600_s1 + $0x28] sm:$0xff]  }
   0x4   :  { %v23_v13 = vrot.slane %v521_v8, 1  ;;  %v40_v14 = vrot.slane %v502_v0, 3  ;;  %v42_v15 = vrot.slane %v512_v2, 3  ;;  %v43_v16 = vrot.slane %v521_v8, 3  ;;  %378 = vmatprep.subr.bf16.mxu0 %v443_v18 }
   0x5   :  { %vm35_vm0 = vcmp.lt.s32.totalorder %v25_v9, 6  ;;  %vm26_vm1 = vcmp.lt.s32.totalorder %v25_v9, 7  ;;  %vm44_vm2 = vcmp.lt.s32.totalorder %v25_v9, 5  ;;  %v41_v17 = vrot.slane %v507_v1, 3  ;;  %379 = vmatpush3.bf16.msra.mxu0 %v443_v18 }
   0x6   :  { %v37_v20 = vsel %vm35_vm0, %v32_v5, %v33_v6  ;;  %v38_v21 = vsel %vm35_vm0, %v31_v4, %v32_v5  ;;  %v28_v22 = vsel %vm26_vm1, %v21_v10, %v22_v11  ;;  %v29_v23 = vsel %vm26_vm1, %v20_v7, %v21_v10  ;;  %380 = vmatprep.subr.bf16.mxu0 %v444_v19 }
   0x7   :  { %v423_v24 = vpack.i.bf16 %v37_v20, %v38_v21  ;;  %v413_v25 = vpack.i.bf16 %v28_v22, %v29_v23  ;;  %v36_v26 = vsel %vm35_vm0, %v33_v6, %v34_v12  ;;  %v39_v27 = vsel %vm35_vm0, %v34_v12, %v31_v4 }
   0x8   :  { %v27_v28 = vsel %vm26_vm1, %v22_v11, %v23_v13  ;;  %v30_v29 = vsel %vm26_vm1, %v23_v13, %v20_v7  ;;  %v428_v30 = vpack.i.bf16 %v39_v27, %v36_v26  ;;  %v45_v32 = vsel %vm44_vm2, %v42_v15, %v43_v16 }
   0x9   :  { %424 = vrot.lane.b32.xlu1 %v423_v24, %s473_s23  ;;  %414 = vrot.lane.b32.xlu0 %v413_v25, %s474_s24  ;;  %v418_v31 = vpack.i.bf16 %v30_v29, %v27_v28  ;;  %v48_v33 = vsel %vm44_vm2, %v43_v16, %v40_v14  ;;  %v46_v34 = vsel %vm44_vm2, %v41_v17, %v42_v15 }
   0xa   :  { %v47_v35 = vsel %vm44_vm2, %v40_v14, %v41_v17  ;;  %381 = vmatpush3.bf16.msra.mxu0 %v444_v19  ;;  %v438_v37 = vpack.i.bf16 %v48_v33, %v45_v32 }
   0xb   :  { %v433_v38 = vpack.i.bf16 %v46_v34, %v47_v35 }
   0xd   :  { %429 = vrot.lane.b32.xlu1 %v428_v30, %s473_s23  ;;  %419 = vrot.lane.b32.xlu0 %v418_v31, %s474_s24 }
   0xe   :  { %8 = vsyncpa [#allocation3], 0  ;;  %382 = vmatprep.subr.bf16.mxu0 %v445_v36  ;;  %v446_v39 = vld [vmem:[%s600_s1 + $0x20] sm:$0xff]   ;;  %s475_s29 = smov 96   ;;  %v447_v40 = vld [vmem:[%s600_s1 + $0x18] sm:$0xff]   ;;  %vm97_vm3 = vcmask 261120  }
   0xf   :  { %383 = vmatpush3.bf16.msra.mxu0 %v445_v36  ;;  %v448_v41 = vld [vmem:[%s600_s1 + $0x10] sm:$0xff]   ;;  %v449_v42 = vld [vmem:[%s600_s1 + $0x8] sm:$0xff]   ;;  %v450_v43 = vld [vmem:[%s600_s1] sm:$0xff]   ;;  %vm102_vm4 = vcmask 523264   ;;  %vm107_vm5 = vcmask 785408   ;;  %v476_v13 = vmov 0.0  }
  0x10   :  { %384 = vmatprep.subr.bf16.mxu0 %v446_v39  ;;  %v256_v12 = vld [vmem:[%s601_s2 + $0x30] sm:$0xff]  ;;  %398 = vmatprep.subr.mxu1 %v476_v13  ;;  %v255_v14 = vld [vmem:[%s601_s2 + $0x28] sm:$0xff]  ;;  %vm477_vm6 = vmmov 0   ;;  %v254_v15 = vld [vmem:[%s601_s2 + $0x20] sm:$0xff]  ;;  %vm235_vm7 = vcmask 195584   ;;  %vm264_vm8 = vcmask 1041409  }
  0x11   :  { %439 = vrot.lane.b32.xlu1 %v438_v37, %s475_s29  ;;  %434 = vrot.lane.b32.xlu0 %v433_v38, %s475_s29  ;;  %v132_v16 = vld [vmem:[%s601_s2 + $0x10] sm:$0xff]  ;;  %v130_v18 = vld [vmem:[%s601_s2] sm:$0xff]  ;;  %s478_s25 = smov [#allocation2]   ;;  %vm338_vm9 = vcmask 254976  }
  0x12   :  { %404 = vmatprep.mubr.msk.f32.mxu1 %vm477_vm6, %v476_v13  ;;  %399 = vmatpush3.msra.mxu1 %v256_v12  ;;  %v133_v21 = vld [vmem:[%s601_s2 + $0x18] sm:$0xff]  ;;  %v131_v24 = vld [vmem:[%s601_s2 + $0x8] sm:$0xff]  ;;  %s346_s26 = sshll.u32 %s478_s25, 4  ;;  %s347_s26 = int_to_ptr.vmem [resolvable:$true] %s346_s26 }
  0x13   :  { %385 = vmatpush3.bf16.msra.mxu0 %v446_v39  ;;  %400 = vmatprep.subr.mxu1 %v476_v13  ;;  %s451_s27 = scalar_lea.vmem %s347_s26, 32  ;;  %p456_p1 = scmp.lt.s32.totalorder %s347_s26, %s347_s26 }
  0x14   :  { %386 = vmatprep.subr.bf16.mxu0 %v447_v40  ;;  %401 = vmatpush3.msra.mxu1 %v255_v14  ;;  %p452_p0 = scmp.ne.s32.totalorder %s347_s26, %s451_s27  ;;  %p457_p2 = scmp.lt.s32.totalorder %s451_s27, %s451_s27 }
  0x15   :  { %402 = vmatprep.subr.mxu1 %v476_v13 }
  0x16   :  { %403 = vmatpush3.msra.mxu1 %v254_v15  ;;  %p458_p3 = por %p457_p2, %p456_p1 }
  0x17   :  { %387 = vmatpush3.bf16.msra.mxu0 %v447_v40 }
  0x18   :  { %388 = vmatprep.subr.bf16.mxu0 %v448_v41  ;;  %p459_p4 = pnand %p458_p3, %p452_p0 }
  0x1b   :  { %389 = vmatpush3.bf16.msra.mxu0 %v448_v41 }
  0x1c   :  { %390 = vmatprep.subr.bf16.mxu0 %v449_v42 }
  0x1f   :  { %391 = vmatpush3.bf16.msra.mxu0 %v449_v42 }
  0x20   :  { %392 = vmatprep.subr.bf16.mxu0 %v450_v43 }
  0x23   :  { %393 = vmatpush3.bf16.msra.mxu0 %v450_v43 }
  0x7b   :  { %v425_v44 = vpop.permute.xlu1 %424  ;;  %v415_v45 = vpop.permute.xlu0 %414 }
  0x7c   :  { %v417_v46 = vunpack.i.h.bf16 %v415_v45  ;;  %v416_v47 = vunpack.i.l.bf16 %v415_v45  ;;  %v427_v52 = vunpack.i.h.bf16 %v425_v44  ;;  %v426_v53 = vunpack.i.l.bf16 %v425_v44 }
  0x7e   :  { %v98_v58 = vsel %vm97_vm3, %v502_v0, %v416_v47  ;;  %v99_v59 = vsel %vm97_vm3, %v507_v1, %v417_v46 }
  0x7f   :  { %v430_v48 = vpop.permute.xlu1 %429  ;;  %v420_v49 = vpop.permute.xlu0 %419  ;;  %v103_v5 = vsel %vm102_vm4, %v98_v58, %v426_v53  ;;  %v104_v6 = vsel %vm102_vm4, %v99_v59, %v427_v52 }
  0x80   :  { %v422_v50 = vunpack.i.h.bf16 %v420_v49  ;;  %v421_v51 = vunpack.i.l.bf16 %v420_v49  ;;  %v432_v54 = vunpack.i.h.bf16 %v430_v48  ;;  %v431_v55 = vunpack.i.l.bf16 %v430_v48 }
  0x82   :  { %v101_v56 = vsel %vm97_vm3, %v521_v8, %v422_v50  ;;  %v100_v57 = vsel %vm97_vm3, %v512_v2, %v421_v51  ;;  %v362_v51 = vld [vmem:[%s601_s2 + $0x38] ss:$0 sm:$0xff] }
  0x83   :  { %v440_v60 = vpop.permute.xlu1 %439  ;;  %v435_v61 = vpop.permute.xlu0 %434  ;;  %v105_v7 = vsel %vm102_vm4, %v100_v57, %v431_v55  ;;  %v106_v8 = vsel %vm102_vm4, %v101_v56, %v432_v54 }
  0x84   :  { %v442_v62 = vunpack.i.h.bf16 %v440_v60  ;;  %v441_v63 = vunpack.i.l.bf16 %v440_v60  ;;  %v437_v3 = vunpack.i.h.bf16 %v435_v61  ;;  %v436_v4 = vunpack.i.l.bf16 %v435_v61 }
  0x86   :  { %v108_v2 = vsel %vm107_vm5, %v103_v5, %v436_v4  ;;  %v109_v9 = vsel %vm107_vm5, %v104_v6, %v437_v3  ;;  %v110_v0 = vsel %vm107_vm5, %v105_v7, %v441_v63  ;;  %v111_v10 = vsel %vm107_vm5, %v106_v8, %v442_v62 }
  0x87   :  { %v112_v1 = vpack.c.bf16 %v109_v9, %v108_v2  ;;  %v113_v11 = vpack.c.bf16 %v111_v10, %v110_v0 }
  0x89   :  { %394 = vmatprep.mubr.bf16.mxu0 %v112_v1 }
  0x8a   :  { %395 = vmatmul.mubr.bf16.vlgmr.msra.gmra.mxu0 %v113_v11 }
 0x14a   :  { %v396_v17 = vpop.f32.mrf.mxu0 }
 0x14b   :  { %v225_v19 = vadd.f32 %v396_v17, %v132_v16 }
 0x14c   :  { %v216_v20 = vpop.f32.mrf.mxu0 }
 0x14d   :  { %v217_v22 = vadd.f32 %v216_v20, %v130_v18  ;;  %v233_v25 = vmax.f32 %v225_v19, 0.0 }
 0x14e   :  { %v397_v23 = vpop.f32.mrf.mxu0 }
 0x14f   :  { %v228_v26 = vadd.f32 %v397_v23, %v133_v21  ;;  %v231_v28 = vmax.f32 %v217_v22, 0.0  ;;  %v245_v31 = vsel %vm235_vm7, %v233_v25, -inf }
 0x150   :  { %v219_v27 = vpop.f32.mrf.mxu0 }
 0x151   :  { %v234_v29 = vmax.f32 %v228_v26, 0.0  ;;  %v220_v30 = vadd.f32 %v219_v27, %v131_v24  ;;  %v236_v35 = vsel %vm235_vm7, %v231_v28, -inf }
 0x153   :  { %v246_v32 = vsel %vm235_vm7, %v234_v29, -inf  ;;  %v232_v33 = vmax.f32 %v220_v30, 0.0 }
 0x154   :  { %v247_v34 = vmax.f32 %v245_v31, %v246_v32 }
 0x155   :  { %v237_v36 = vsel %vm235_vm7, %v232_v33, -inf }
 0x156   :  { %v248_v37 = vrot.slane %v247_v34, 4  ;;  %v238_v38 = vmax.f32 %v236_v35, %v237_v36 }
 0x158   :  { %v249_v39 = vmax.f32 %v247_v34, %v248_v37  ;;  %v239_v40 = vrot.slane %v238_v38, 4 }
 0x15a   :  { %v250_v41 = vrot.slane %v249_v39, 2  ;;  %v240_v42 = vmax.f32 %v238_v38, %v239_v40 }
 0x15c   :  { %v251_v43 = vmax.f32 %v249_v39, %v250_v41  ;;  %v241_v44 = vrot.slane %v240_v42, 2 }
 0x15e   :  { %v242_v45 = vmax.f32 %v240_v42, %v241_v44  ;;  %v252_v46 = vrot.slane %v251_v43, 1 }
 0x160   :  { %v243_v47 = vrot.slane %v242_v45, 1  ;;  %v253_v49 = vmax.f32 %v251_v43, %v252_v46 }
 0x162   :  { %v244_v48 = vmax.f32 %v242_v45, %v243_v47 }
 0x164   :  { %v265_v50 = vsel %vm264_vm8, %v253_v49, %v244_v48 }
 0x165   :  { %405 = vmatmul.mubr.msk.f32.vlgmr.msra.gmra.mxu1 %vm235_vm7, %v265_v50 }
 0x225   :  { %v334_v52 = vpop.f32.mrf.mxu1 }
 0x226   :  { %v335_v53 = vadd.f32 %v362_v51, %v334_v52 }
 0x227   :  { %v406_v54 = vpop.f32.mrf.mxu1 }
 0x228   :  { %339 = vst.msk [vmem:[#allocation2] sm:$0x3] %vm338_vm9, %v335_v53 }
 0x229   :  { %462 = shalt.err (!%p459_p4)
}
 0x22a   :  { %349 = dma.vmem_to_hbm [thread:$0]  %s347_s26, 32, %s602_s3, [#allocation3]  }
 0x22b   :  { %471 = dma.done.wait [#allocation3], 32  }
 0x22c   :  { %472 = vsyncadd [#allocation3], 4294967264 }
 0x22d   :  { %353 = vsyncpa [#allocation3], 1 }

</bundles_post_ra>
